<compile_context>
chip_gen: v5e
topology: v5e:2x2
jax: 0.10.0
libtpu: 0.0.40
codegen_flags: <defaults>
</compile_context>

<pallas_src>
import functools

import jax
import jax.numpy as jnp
from jax.experimental import pallas as pl
from jax.experimental.pallas import tpu as pltpu


def _round_up(x, m):
    return ((x + m - 1) // m) * m


def _hclpb_kernel(lang_ref, signer_ref, wa_l_ref, wa_s_ref, ba_ref,
                  w2_ref, b2_ref, out_ref):
    # Folded (embed + first MLP layer) pre-activation: two small contractions
    # into one (tb, 2D) tile, then ReLU on the VPU.
    pre = (
        jnp.dot(lang_ref[...], wa_l_ref[...], preferred_element_type=jnp.float32)
        + jnp.dot(signer_ref[...], wa_s_ref[...], preferred_element_type=jnp.float32)
        + ba_ref[...]
    )
    h = jnp.maximum(pre, 0.0)
    # Fused block-diagonal second MLP layers -> lane-dense output slab laid
    # out as [family prompts | signer prompts].
    out_ref[...] = (
        jnp.dot(h, w2_ref[...], preferred_element_type=jnp.float32) + b2_ref[...]
    )


def init_params(key, num_lang, num_signer, d_model, m_family, m_signer):
    """Deterministic parameter init (PyTorch Linear convention: W is (out, in))."""
    def linear(key, fan_in, fan_out):
        kw, kb = jax.random.split(key)
        bound = 1.0 / jnp.sqrt(fan_in)
        w = jax.random.uniform(kw, (fan_out, fan_in), jnp.float32, -bound, bound)
        b = jax.random.uniform(kb, (fan_out,), jnp.float32, -bound, bound)
        return w, b

    keys = jax.random.split(key, 6)
    p = {}
    p["wl"], p["bl"] = linear(keys[0], num_lang, d_model)
    p["ws"], p["bs"] = linear(keys[1], num_signer, d_model)
    p["wf1"], p["bf1"] = linear(keys[2], d_model, d_model)
    p["wf2"], p["bf2"] = linear(keys[3], d_model, m_family * d_model)
    p["wg1"], p["bg1"] = linear(keys[4], 2 * d_model, d_model)
    p["wg2"], p["bg2"] = linear(keys[5], d_model, m_signer * d_model)
    return p


def prepare_params(params, *, num_lang, num_signer, d_model, m_family, m_signer):
    """Build the fused (in, out)-layout weights ONCE, outside the jitted forward."""
    D = d_model
    nf = m_family * D
    ns = m_signer * D
    out_w = nf + ns                              # unpadded lane-dense slab width

    wl = params["wl"].T                          # (num_lang, D)
    ws = params["ws"].T                          # (num_signer, D)
    wf1 = params["wf1"].T                        # (D, D)
    wg1 = params["wg1"].T                        # (2D, D): rows 0:D lang half, D:2D signer half
    wf2 = params["wf2"].T                        # (D, nf)
    wg2 = params["wg2"].T                        # (D, ns)

    # Fold embeddings into the first MLP layer (no nonlinearity in between).
    #   pre[:, :D]  = lang @ (Wl@Wf1)                         + (bl@Wf1 + bf1)
    #   pre[:, D:]  = lang @ (Wl@Wg1[:D]) + signer @ (Ws@Wg1[D:]) + ([bl|bs]@Wg1 + bg1)
    wa_l = jnp.concatenate([wl @ wf1, wl @ wg1[:D]], axis=1)            # (num_lang, 2D)
    wa_s = jnp.concatenate(
        [jnp.zeros((num_signer, D), jnp.float32), ws @ wg1[D:]], axis=1  # (num_signer, 2D)
    )
    ba_f = params["bl"] @ wf1 + params["bf1"]
    ba_s = jnp.concatenate([params["bl"], params["bs"]]) @ wg1 + params["bg1"]
    b_a = jnp.concatenate([ba_f, ba_s]).reshape(1, 2 * D)

    # Second MLP layers, block-diagonal, unpadded output slab.
    w2 = jnp.zeros((2 * D, out_w), jnp.float32)
    w2 = w2.at[:D, :nf].set(wf2)
    w2 = w2.at[D:, nf:].set(wg2)
    b2 = jnp.concatenate([params["bf2"], params["bg2"]]).reshape(1, out_w)

    return {"wa_l": wa_l, "wa_s": wa_s, "b_a": b_a, "w2": w2, "b2": b2}


@functools.partial(
    jax.jit, static_argnames=("d_model", "m_family", "m_signer", "batch_tile")
)
def hclpb_forward(lang_onehot, signer_onehot, prep, *, d_model, m_family, m_signer,
                  batch_tile=1024):
    B = lang_onehot.shape[0]
    D = d_model
    nf = m_family * D
    ns = m_signer * D
    out_w = nf + ns

    lang = lang_onehot.astype(jnp.float32)
    signer = signer_onehot.astype(jnp.float32)
    kl = lang.shape[1]
    ks = signer.shape[1]

    # Batch tiling: one tile for small B; otherwise balanced tiles near
    # batch_tile (tail padding <= 8 rows per tile).
    if B <= batch_tile:
        num_tiles = 1
        tb = max(8, _round_up(B, 8))
    else:
        num_tiles = -(-B // batch_tile)
        tb = _round_up(-(-B // num_tiles), 8)

    # VMEM clamp (v7x: 64 MiB physical): weights stay resident, blocked
    # operands are double-buffered by the pipeline.
    weight_bytes = 4 * (prep["wa_l"].size + prep["wa_s"].size + prep["b_a"].size
                        + prep["w2"].size + prep["b2"].size)

    def tile_bytes(t):
        return weight_bytes + 2 * 4 * t * (kl + ks + out_w)

    budget = 24 * 1024 * 1024
    while tb > 8 and tile_bytes(tb) > budget:
        tb = _round_up(tb // 2, 8)
        num_tiles = -(-B // tb)

    b_pad = num_tiles * tb
    if b_pad != B:
        lang = jnp.pad(lang, ((0, b_pad - B), (0, 0)))
        signer = jnp.pad(signer, ((0, b_pad - B), (0, 0)))

    const2 = lambda i: (0, 0)                    # weights/biases stay VMEM-resident

    out = pl.pallas_call(
        _hclpb_kernel,
        out_shape=jax.ShapeDtypeStruct((b_pad, out_w), jnp.float32),
        grid=(num_tiles,),
        in_specs=[
            pl.BlockSpec((tb, kl), lambda i: (i, 0)),
            pl.BlockSpec((tb, ks), lambda i: (i, 0)),
            pl.BlockSpec(prep["wa_l"].shape, const2),
            pl.BlockSpec(prep["wa_s"].shape, const2),
            pl.BlockSpec(prep["b_a"].shape, const2),
            pl.BlockSpec(prep["w2"].shape, const2),
            pl.BlockSpec(prep["b2"].shape, const2),
        ],
        out_specs=pl.BlockSpec((tb, out_w), lambda i: (i, 0)),
        compiler_params=pltpu.CompilerParams(
            dimension_semantics=("parallel",),
            vmem_limit_bytes=int(min(64 * 1024 * 1024,
                                     max(32 * 1024 * 1024, 2 * tile_bytes(tb)))),
        ),
    )(lang, signer, prep["wa_l"], prep["wa_s"], prep["b_a"], prep["w2"], prep["b2"])

    # The slab is already [l_prompt | s_prompt]: single reshape, no slice+concat.
    prompts = out[:B].reshape(B, m_family + m_signer, D)
    l_prompt = prompts[:, :m_family]
    s_prompt = prompts[:, m_family:]
    return prompts, l_prompt, s_prompt


def _reference_forward(lang_onehot, signer_onehot, params, d_model, m_family, m_signer):
    """Pure-JAX reference mirroring the PyTorch module exactly."""
    x = lang_onehot.astype(jnp.float32)
    s = signer_onehot.astype(jnp.float32)
    lang_embed = x @ params["wl"].T + params["bl"]
    signer_embed = s @ params["ws"].T + params["bs"]
    h_f = jnp.maximum(lang_embed @ params["wf1"].T + params["bf1"], 0.0)
    l_prompt = (h_f @ params["wf2"].T + params["bf2"]).reshape(-1, m_family, d_model)
    signer_input = jnp.concatenate([lang_embed, signer_embed], axis=-1)
    h_s = jnp.maximum(signer_input @ params["wg1"].T + params["bg1"], 0.0)
    s_prompt = (h_s @ params["wg2"].T + params["bg2"]).reshape(-1, m_signer, d_model)
    prompts = jnp.concatenate([l_prompt, s_prompt], axis=1)
    return prompts, l_prompt, s_prompt


if __name__ == "__main__":
    # Small, module-consistent shapes.
    B = 2
    NUM_LANG = 6         # |language_classes|
    NUM_SIGNER = 10      # |signer_classes|
    D_MODEL = 32
    M_FAMILY = 4
    M_SIGNER = 3

    key = jax.random.PRNGKey(0)
    k_params, k_lang, k_signer = jax.random.split(key, 3)

    params = init_params(k_params, NUM_LANG, NUM_SIGNER, D_MODEL, M_FAMILY, M_SIGNER)
    prep = prepare_params(
        params, num_lang=NUM_LANG, num_signer=NUM_SIGNER,
        d_model=D_MODEL, m_family=M_FAMILY, m_signer=M_SIGNER,
    )

    lang_ids = jax.random.randint(k_lang, (B,), 0, NUM_LANG)
    signer_ids = jax.random.randint(k_signer, (B,), 0, NUM_SIGNER)
    lang_onehot = jax.nn.one_hot(lang_ids, NUM_LANG, dtype=jnp.float32)
    signer_onehot = jax.nn.one_hot(signer_ids, NUM_SIGNER, dtype=jnp.float32)

    prompts, l_prompt, s_prompt = hclpb_forward(
        lang_onehot, signer_onehot, prep,
        d_model=D_MODEL, m_family=M_FAMILY, m_signer=M_SIGNER,
    )
    jax.block_until_ready((prompts, l_prompt, s_prompt))

    # Sanity check against pure-JAX reference (fold adds ~1 ulp of f32 rounding).
    ref_p, ref_l, ref_s = _reference_forward(
        lang_onehot, signer_onehot, params, D_MODEL, M_FAMILY, M_SIGNER
    )
    assert prompts.shape == (B, M_FAMILY + M_SIGNER, D_MODEL)
    assert l_prompt.shape == (B, M_FAMILY, D_MODEL)
    assert s_prompt.shape == (B, M_SIGNER, D_MODEL)
    assert jnp.allclose(prompts, ref_p, atol=1e-5)
    assert jnp.allclose(l_prompt, ref_l, atol=1e-5)
    assert jnp.allclose(s_prompt, ref_s, atol=1e-5)

    print("KERNEL_OK")
</pallas_src>

<mosaic_0001>
module attributes {stable_mosaic.version = 11 : i64} {
  func.func @_hclpb_kernel(%arg0: i32, %arg1: memref<8x6xf32, #tpu.memory_space<vmem>>, %arg2: memref<8x10xf32, #tpu.memory_space<vmem>>, %arg3: memref<6x64xf32, #tpu.memory_space<vmem>>, %arg4: memref<10x64xf32, #tpu.memory_space<vmem>>, %arg5: memref<1x64xf32, #tpu.memory_space<vmem>>, %arg6: memref<64x224xf32, #tpu.memory_space<vmem>>, %arg7: memref<1x224xf32, #tpu.memory_space<vmem>>, %arg8: memref<8x224xf32, #tpu.memory_space<vmem>>) attributes {dimension_semantics = [#tpu.dimension_semantics<parallel>], iteration_bounds = array<i64: 1>, scalar_prefetch = 0 : i64, scratch_operands = 0 : i64, tpu.core_type = #tpu.core_type<tc>, window_params = [{transform_indices = @transform_0, window_bounds = array<i64: 8, 6>}, {transform_indices = @transform_1, window_bounds = array<i64: 8, 10>}, {pipeline_mode = #tpu.pipeline_mode<synchronous>, transform_indices = @transform_2, window_bounds = array<i64: 6, 64>}, {pipeline_mode = #tpu.pipeline_mode<synchronous>, transform_indices = @transform_3, window_bounds = array<i64: 10, 64>}, {pipeline_mode = #tpu.pipeline_mode<synchronous>, transform_indices = @transform_4, window_bounds = array<i64: 1, 64>}, {pipeline_mode = #tpu.pipeline_mode<synchronous>, transform_indices = @transform_5, window_bounds = array<i64: 64, 224>}, {pipeline_mode = #tpu.pipeline_mode<synchronous>, transform_indices = @transform_6, window_bounds = array<i64: 1, 224>}, {transform_indices = @transform_7, window_bounds = array<i64: 8, 224>}]} {
    %c0 = arith.constant 0 : index
    %c0_0 = arith.constant 0 : index
    %0 = vector.load %arg1[%c0, %c0_0] : memref<8x6xf32, #tpu.memory_space<vmem>>, vector<8x6xf32>
    %c0_1 = arith.constant 0 : index
    %c0_2 = arith.constant 0 : index
    %1 = vector.load %arg3[%c0_1, %c0_2] : memref<6x64xf32, #tpu.memory_space<vmem>>, vector<6x64xf32>
    %cst = arith.constant dense<0.000000e+00> : vector<8x64xf32>
    %2 = tpu.matmul %0, %1, %cst {dimension_numbers = #tpu.dot_dimension_numbers<[1], [0], [0], [1], [0, 0, 1, 1], [], []>} : vector<8x6xf32>, vector<6x64xf32>, vector<8x64xf32> -> vector<8x64xf32>
    %c0_3 = arith.constant 0 : index
    %c0_4 = arith.constant 0 : index
    %3 = vector.load %arg2[%c0_3, %c0_4] : memref<8x10xf32, #tpu.memory_space<vmem>>, vector<8x10xf32>
    %c0_5 = arith.constant 0 : index
    %c0_6 = arith.constant 0 : index
    %4 = vector.load %arg4[%c0_5, %c0_6] : memref<10x64xf32, #tpu.memory_space<vmem>>, vector<10x64xf32>
    %cst_7 = arith.constant dense<0.000000e+00> : vector<8x64xf32>
    %5 = tpu.matmul %3, %4, %cst_7 {dimension_numbers = #tpu.dot_dimension_numbers<[1], [0], [0], [1], [0, 0, 1, 1], [], []>} : vector<8x10xf32>, vector<10x64xf32>, vector<8x64xf32> -> vector<8x64xf32>
    %6 = arith.addf %2, %5 : vector<8x64xf32>
    %c0_8 = arith.constant 0 : index
    %c0_9 = arith.constant 0 : index
    %7 = vector.load %arg5[%c0_8, %c0_9] : memref<1x64xf32, #tpu.memory_space<vmem>>, vector<1x64xf32>
    %8 = vector.broadcast %7 : vector<1x64xf32> to vector<8x64xf32>
    %9 = arith.addf %6, %8 : vector<8x64xf32>
    %cst_10 = arith.constant 0.000000e+00 : f32
    %10 = vector.broadcast %cst_10 : f32 to vector<8x64xf32>
    %11 = arith.maximumf %9, %10 : vector<8x64xf32>
    %c0_11 = arith.constant 0 : index
    %c0_12 = arith.constant 0 : index
    %12 = vector.load %arg6[%c0_11, %c0_12] : memref<64x224xf32, #tpu.memory_space<vmem>>, vector<64x224xf32>
    %cst_13 = arith.constant dense<0.000000e+00> : vector<8x224xf32>
    %13 = tpu.matmul %11, %12, %cst_13 {dimension_numbers = #tpu.dot_dimension_numbers<[1], [0], [0], [1], [0, 0, 1, 1], [], []>} : vector<8x64xf32>, vector<64x224xf32>, vector<8x224xf32> -> vector<8x224xf32>
    %c0_14 = arith.constant 0 : index
    %c0_15 = arith.constant 0 : index
    %14 = vector.load %arg7[%c0_14, %c0_15] : memref<1x224xf32, #tpu.memory_space<vmem>>, vector<1x224xf32>
    %15 = vector.broadcast %14 : vector<1x224xf32> to vector<8x224xf32>
    %16 = arith.addf %13, %15 : vector<8x224xf32>
    %c0_16 = arith.constant 0 : index
    %c0_17 = arith.constant 0 : index
    %17 = vector.load %arg8[%c0_16, %c0_17] : memref<8x224xf32, #tpu.memory_space<vmem>>, vector<8x224xf32>
    tpu.vector_store %arg8[%c0_16, %c0_17], %16 {strides = array<i32>} : memref<8x224xf32, #tpu.memory_space<vmem>>, vector<8x224xf32>,
    return
  }
  func.func @transform_0(%arg0: i32) -> (i32, i32) {
    %c0_i32 = arith.constant 0 : i32
    %c0_i32_0 = arith.constant 0 : i32
    return %arg0, %c0_i32 : i32, i32
  }
  func.func @transform_1(%arg0: i32) -> (i32, i32) {
    %c0_i32 = arith.constant 0 : i32
    %c0_i32_0 = arith.constant 0 : i32
    return %arg0, %c0_i32 : i32, i32
  }
  func.func @transform_2(%arg0: i32) -> (i32, i32) {
    %c0_i32 = arith.constant 0 : i32
    %c0_i32_0 = arith.constant 0 : i32
    %c0_i32_1 = arith.constant 0 : i32
    return %c0_i32, %c0_i32_0 : i32, i32
  }
  func.func @transform_3(%arg0: i32) -> (i32, i32) {
    %c0_i32 = arith.constant 0 : i32
    %c0_i32_0 = arith.constant 0 : i32
    %c0_i32_1 = arith.constant 0 : i32
    return %c0_i32, %c0_i32_0 : i32, i32
  }
  func.func @transform_4(%arg0: i32) -> (i32, i32) {
    %c0_i32 = arith.constant 0 : i32
    %c0_i32_0 = arith.constant 0 : i32
    %c0_i32_1 = arith.constant 0 : i32
    return %c0_i32, %c0_i32_0 : i32, i32
  }
  func.func @transform_5(%arg0: i32) -> (i32, i32) {
    %c0_i32 = arith.constant 0 : i32
    %c0_i32_0 = arith.constant 0 : i32
    %c0_i32_1 = arith.constant 0 : i32
    return %c0_i32, %c0_i32_0 : i32, i32
  }
  func.func @transform_6(%arg0: i32) -> (i32, i32) {
    %c0_i32 = arith.constant 0 : i32
    %c0_i32_0 = arith.constant 0 : i32
    %c0_i32_1 = arith.constant 0 : i32
    return %c0_i32, %c0_i32_0 : i32, i32
  }
  func.func @transform_7(%arg0: i32) -> (i32, i32) {
    %c0_i32 = arith.constant 0 : i32
    %c0_i32_0 = arith.constant 0 : i32
    return %arg0, %c0_i32 : i32, i32
  }
}

</mosaic_0001>

<bundles_post_ra>
// kernel: hclpb_forward.1
= control target key start
LH: loop header
LB: loop body
LE: loop exit
PB: predicated region body
PF: predicated region fallthrough
CT: control target
= control target key end

     0   :  { %12 = vsyncpa [#allocation3], 0  ;;  %s374_s0 = inlined_call_operand.vmem [shape: f32[8,6], index: 0, kind: input, shape index: {}]   ;;  %s375_s1 = inlined_call_operand.vmem [shape: f32[8,10], index: 1, kind: input, shape index: {}]   ;;  %s376_s2 = inlined_call_operand.vmem [shape: f32[6,64], index: 2, kind: input, shape index: {}]   ;;  %s377_s3 = inlined_call_operand.vmem [shape: f32[10,64], index: 3, kind: input, shape index: {}]   ;;  %s378_s4 = inlined_call_operand.hbm [shape: f32[1,64], index: 4, kind: input, shape index: {}]   ;;  %s379_s5 = inlined_call_operand.hbm [shape: f32[64,224], index: 5, kind: input, shape index: {}]   ;;  %s380_s6 = inlined_call_operand.hbm [shape: f32[1,224], index: 6, kind: input, shape index: {}]   ;;  %s381_s7 = inlined_call_operand.vmem [shape: f32[8,224], index: 7, kind: output, shape index: {}]  }
   0x1   :  { %13 = vsyncpa [#allocation5], 0  ;;  %s37_s26 = sshll.u32 %s379_s5, 4  ;;  %s299_s27 = smov [#allocation4]   ;;  %s38_s26 = int_to_ptr.hbm [resolvable:$true] %s37_s26 }
   0x2   :  { %s39_s28 = sshll.u32 %s299_s27, 4  ;;  %s27_s8 = sshll.u32 %s378_s4, 4  ;;  %s40_s28 = int_to_ptr.vmem [resolvable:$true] %s39_s28  ;;  %s28_s8 = int_to_ptr.hbm [resolvable:$true] %s27_s8 }
   0x3   :  { %s300_s9 = smov 256   ;;  %s301_s10 = smov 16  }
   0x4   :  { %45 = dma.hbm_to_vmem [thread:$0]  %s38_s26, 2048, %s40_s28, [#allocation5], %s300_s9, %s300_s9, %s301_s10  }
   0x5   :  { %s302_s11 = smov [#allocation2]   ;;  %s51_s15 = sshll.u32 %s380_s6, 4  ;;  %s52_s15 = int_to_ptr.hbm [resolvable:$true] %s51_s15 }
   0x6   :  { %s29_s12 = sshll.u32 %s302_s11, 4  ;;  %s303_s5 = smov [#allocation6]   ;;  %s30_s12 = int_to_ptr.vmem [resolvable:$true] %s29_s12 }
   0x7   :  { %32 = dma.hbm_to_vmem [thread:$0]  %s28_s8, 16, %s30_s12, [#allocation3]  }
   0x8   :  { %s53_s16 = sshll.u32 %s303_s5, 4  ;;  %s54_s16 = int_to_ptr.vmem [resolvable:$true] %s53_s16 }
   0x9   :  { %56 = dma.hbm_to_vmem [thread:$0]  %s52_s15, 32, %s54_s16, [#allocation5]  }
   0xa   :  { %295 = dma.done.wait [#allocation3], 16  }
   0xb   :  { %296 = vsyncadd [#allocation3], 4294967280 }
   0xc   :  { %297 = dma.done.wait [#allocation5], 2080  }
   0xd   :  { %298 = vsyncadd [#allocation5], 4294965216  ;;  %vm78_vm0 = vcmask 1041408   ;;  %vm106_vm1 = vcmask 1045504   ;;  %vm102_vm2 = vcmask 48128   ;;  %v72_v1 = vld [vmem:[%s377_s3] sm:$0xff] }
   0xe   :  { %v73_v0 = vld [vmem:[%s377_s3 + $0x8] sm:$0x3]  ;;  %v70_v2 = vld [vmem:[%s376_s2] sm:$0x3f]  ;;  %vm74_vm3 = vcmask 80896   ;;  %v150_v5 = vld [vmem:[#allocation4 + $0x70] sm:$0xff] }
   0xf   :  { %211 = vmatpush.msk.msra.mxu0 %vm78_vm0, %v73_v0  ;;  %213 = vmatpush.msk.msra.mxu1 %vm106_vm1, %v70_v2  ;;  %v71_v3 = vld [vmem:[%s375_s1] sm:$0xff]  ;;  %v149_v8 = vld [vmem:[#allocation4 + $0x68] sm:$0xff]  ;;  %v146_v9 = vld [vmem:[#allocation4 + $0x50] sm:$0xff]  ;;  %vm158_vm4 = vcmask 523264   ;;  %vm203_vm5 = vcmask 785408  }
  0x10   :  { %v69_v4 = vld [vmem:[%s374_s0] sm:$0xff]  ;;  %170 = vmatpush.msra.mxu2 %v150_v5  ;;  %v145_v12 = vld [vmem:[#allocation4 + $0x48] sm:$0xff]  ;;  %v142_v13 = vld [vmem:[#allocation4 + $0x30] sm:$0xff] }
  0x11   :  { %214 = vmatmul.msk.f32.vlgmr.msra.gmra.mxu1 %vm102_vm2, %v69_v4  ;;  %v151_v6 = vld [vmem:[#allocation4 + $0x78] sm:$0xff]  ;;  %v148_v7 = vld [vmem:[#allocation4 + $0x60] sm:$0xff]  ;;  %97 = vmatpush.msra.mxu0 %v72_v1  ;;  %v141_v16 = vld [vmem:[#allocation4 + $0x28] sm:$0xff] }
  0x12   :  { %190 = vmatpush.msra.mxu3 %v151_v6  ;;  %212 = vmatmul.msk.f32.vlgmr.msra.gmra.mxu0 %vm74_vm3, %v71_v3  ;;  %v147_v10 = vld [vmem:[#allocation4 + $0x58] sm:$0xff]  ;;  %v144_v11 = vld [vmem:[#allocation4 + $0x40] sm:$0xff]  ;;  %v138_v17 = vld [vmem:[#allocation4 + $0x10] sm:$0xff] }
  0x13   :  { %171 = vmatpush.msra.mxu2 %v148_v7  ;;  %v143_v14 = vld [vmem:[#allocation4 + $0x38] sm:$0xff]  ;;  %v140_v15 = vld [vmem:[#allocation4 + $0x20] sm:$0xff]  ;;  %v137_v20 = vld [vmem:[#allocation4 + $0x8] sm:$0xff] }
  0x14   :  { %191 = vmatpush.msra.mxu3 %v149_v8  ;;  %v139_v18 = vld [vmem:[#allocation4 + $0x18] sm:$0xff]  ;;  %v136_v19 = vld [vmem:[#allocation4] sm:$0xff] }
  0x15   :  { %172 = vmatpush.msra.mxu2 %v146_v9  ;;  %v222_v22 = vld [vmem:[#allocation2] ss:$0 sm:$0xff]  ;;  %v152_v27 = vld [vmem:[#allocation6] sm:$0x3] }
  0x16   :  { %192 = vmatpush.msra.mxu3 %v147_v10  ;;  %v154_v28 = vperm.slane %v152_v27, 0  ;;  %v155_v29 = vperm.slane %v152_v27, 1 }
  0x17   :  { %173 = vmatpush.msra.mxu2 %v144_v11 }
  0x18   :  { %193 = vmatpush.msra.mxu3 %v145_v12 }
  0x19   :  { %174 = vmatpush.msra.mxu2 %v142_v13 }
  0x1a   :  { %194 = vmatpush.msra.mxu3 %v143_v14 }
  0x1b   :  { %175 = vmatpush.msra.mxu2 %v140_v15 }
  0x1c   :  { %195 = vmatpush.msra.mxu3 %v141_v16 }
  0x1d   :  { %176 = vmatpush.msra.mxu2 %v138_v17 }
  0x1e   :  { %196 = vmatpush.msra.mxu3 %v139_v18 }
  0x1f   :  { %177 = vmatpush.msra.mxu2 %v136_v19 }
  0x20   :  { %197 = vmatpush.msra.mxu3 %v137_v20 }
  0x8e   :  { %v127_v21 = vpop.f32.mrf.mxu1 }
  0x8f   :  { %v99_v23 = vpop.f32.mrf.mxu0 }
  0x90   :  { %v128_v24 = vadd.f32 %v127_v21, %v99_v23 }
  0x92   :  { %v134_v25 = vadd.f32 %v222_v22, %v128_v24 }
  0x94   :  { %v135_v26 = vmax.f32 %v134_v25, 0.0 }
  0x96   :  { %215 = vmatmul.msk.f32.vlgmr.msra.gmra.mxu2 %vm158_vm4, %v135_v26  ;;  %216 = vmatmul.msk.f32.vlgmr.msra.gmra.mxu3 %vm158_vm4, %v135_v26 }
 0x119   :  { %v179_v30 = vpop.f32.mrf.mxu2  ;;  %v199_v31 = vpop.f32.mrf.mxu3 }
 0x11a   :  { %v180_v32 = vadd.f32 %v179_v30, %v154_v28  ;;  %v200_v33 = vadd.f32 %v199_v31, %v155_v29 }
 0x11c   :  { %202 = vst [vmem:[%s381_s7] sm:$0xff] %v180_v32 }
 0x11d   :  { %204 = vst.msk [vmem:[%s381_s7 + $0x8] sm:$0xff] %vm203_vm5, %v200_v33 }
 0x11e   :  { %209 = vsyncpa [#allocation3], 1 }
 0x11f   :  { %210 = vsyncpa [#allocation5], 1 }

</bundles_post_ra>
